<compile_context>
chip_gen: v7x
topology: tpu7x:2x2x1
jax: 0.10.0
libtpu: 0.0.40
codegen_flags: <defaults>
</compile_context>

<pallas_src>
import functools
import math

import jax
import jax.numpy as jnp
from jax.experimental import pallas as pl
from jax.experimental.pallas import tpu as pltpu


# -----------------------------------------------------------------------------
# Kernels
# -----------------------------------------------------------------------------
def kv_projection_kernel(x_ref, wkv_ref, bkv_ref, kv_ref):
    """kv[b, tile] = x[b, tile] @ [Wk | Wv] + [bk | bv]  (K|V fused on lanes)."""
    x = x_ref[0].astype(wkv_ref.dtype)                       # (TS, D)
    kv = jnp.dot(x, wkv_ref[...], preferred_element_type=jnp.float32) + bkv_ref[0]
    kv_ref[0] = kv.astype(kv_ref.dtype)


def transformer_block_kernel(
    x_ref,               # (1, TQ, D)  f32   query tile of the input
    kv_ref,              # (1, S, 2D)  cdt   fused K|V for this batch row
    wq_ref, bq_ref,      # (D, D) cdt (1/sqrt(dk) folded in), (1, D) f32 (scaled)
    wo_ref, bo_ref,      # (D, D) cdt, (1, D) f32
    g1_ref, be1_ref,     # (1, D) f32
    w1_ref, b1_ref,      # (D, H_FF) cdt, (1, H_FF) f32
    w2_ref, b2_ref,      # (H_FF, D) cdt, (1, D) f32
    g2_ref, be2_ref,     # (1, D) f32
    out_ref,             # (1, TQ, D) f32
    *, d_model, n_heads, k_tile, num_k_blocks, approx_recip,
    eps=1e-5, neg_slope=0.01,
):
    cdt = wq_ref.dtype                       # compute dtype for MXU operands
    d_k = d_model // n_heads
    q_tile = x_ref.shape[1]

    x_q = x_ref[0]                                            # (TQ, D) f32 residual
    xq_c = x_q.astype(cdt)

    # Q projection for this tile; 1/sqrt(d_k) folded into wq/bq on the host.
    q = jnp.dot(xq_c, wq_ref[...], preferred_element_type=jnp.float32) + bq_ref[0]

    # ---- Per-head flash-style attention over K blocks ------------------------
    # TODO(synk): if d_k is not a multiple of 128, per-head lane slices may cost
    # relayouts; packing multiple heads per MXU push / padding head width to 128
    # lanes would improve score throughput on v6e/v7x.
    ctx_heads = []
    for h in range(n_heads):
        lo, hi = h * d_k, (h + 1) * d_k
        qh = q[:, lo:hi].astype(cdt)                          # (TQ, d_k)

        def k_block_step(i, carry, qh=qh, lo=lo, hi=hi):
            m, l, acc = carry
            ks = pl.multiple_of(i * k_tile, k_tile)
            kv_blk = kv_ref[0, pl.ds(ks, k_tile), :]          # (TK, 2D) cdt
            kh = kv_blk[:, lo:hi]                             # (TK, d_k)
            vh = kv_blk[:, d_model + lo:d_model + hi]         # (TK, d_k)
            s = jax.lax.dot_general(                          # (TQ, TK) = q . k^T
                qh, kh, (((1,), (1,)), ((), ())),
                preferred_element_type=jnp.float32)
            m_new = jnp.maximum(m, jnp.max(s, axis=-1, keepdims=True))
            alpha = jnp.exp(m - m_new)
            p = jnp.exp(s - m_new)                            # f32 softmax numerics
            l_new = alpha * l + jnp.sum(p, axis=-1, keepdims=True)
            acc_new = alpha * acc + jnp.dot(
                p.astype(cdt), vh, preferred_element_type=jnp.float32)
            return m_new, l_new, acc_new

        carry0 = (jnp.full((q_tile, 1), -jnp.inf, jnp.float32),
                  jnp.zeros((q_tile, 1), jnp.float32),
                  jnp.zeros((q_tile, d_k), jnp.float32))
        m, l, acc = jax.lax.fori_loop(
            0, num_k_blocks, k_block_step, carry0,
            unroll=(num_k_blocks <= 8))
        ctx_heads.append(acc * pl.reciprocal(l, approx=approx_recip))
    ctx = jnp.concatenate(ctx_heads, axis=-1)                 # (TQ, D) f32

    attn_out = jnp.dot(ctx.astype(cdt), wo_ref[...],
                       preferred_element_type=jnp.float32) + bo_ref[0]

    # ---- Residual + LayerNorm 1 (f32, rsqrt on EUP) ---------------------------
    h1 = x_q + attn_out
    mu1 = jnp.mean(h1, axis=-1, keepdims=True)
    var1 = jnp.mean(jnp.square(h1 - mu1), axis=-1, keepdims=True)
    x1 = (h1 - mu1) * jax.lax.rsqrt(var1 + eps) * g1_ref[0] + be1_ref[0]

    # ---- FeedForward ----------------------------------------------------------
    ffh = jnp.dot(x1.astype(cdt), w1_ref[...],
                  preferred_element_type=jnp.float32) + b1_ref[0]
    ffh = jnp.where(ffh > 0, ffh, neg_slope * ffh)            # LeakyReLU(0.01)
    ffo = jnp.dot(ffh.astype(cdt), w2_ref[...],
                  preferred_element_type=jnp.float32) + b2_ref[0]

    # ---- Residual + LayerNorm 2 -----------------------------------------------
    h2 = x1 + ffo
    mu2 = jnp.mean(h2, axis=-1, keepdims=True)
    var2 = jnp.mean(jnp.square(h2 - mu2), axis=-1, keepdims=True)
    x2 = (h2 - mu2) * jax.lax.rsqrt(var2 + eps) * g2_ref[0] + be2_ref[0]

    out_ref[0] = x2.astype(out_ref.dtype)

    # TODO(synk): dropout omitted (eval-mode identity); training dropout would
    # need pltpu.prng_seed / prng_random_bits inside the kernel.
    # TODO(synk): for extremely long S, also tile the fused KV on a third grid
    # axis so the (1, S, 2D) KV block need not be fully VMEM-resident.


# -----------------------------------------------------------------------------
# Host-side wrappers
# -----------------------------------------------------------------------------
def _vmem_capacity_bytes():
    try:
        info = pltpu.get_tpu_info()
        cap = int(getattr(info, "vmem_capacity_bytes", 0))
        if cap > 0:
            return cap
    except Exception:
        pass
    return 64 << 20   # conservative default (v7x per-TensorCore VMEM)


def _pick_tile(S, max_tile):
    for cand in (512, 256, 128, 64, 32, 16, 8):
        if cand <= max_tile and S % cand == 0:
            return cand
    return S


def _full_spec(shape, single_buffer):
    nd = len(shape)
    index_map = lambda b, t, _nd=nd: (0,) * _nd
    if single_buffer:
        return pl.BlockSpec(shape, index_map, pipeline_mode=pl.Buffered(1))
    return pl.BlockSpec(shape, index_map)


def _project_kv(x, wkv, bkv, s_tile, compute_dtype, vmem_limit):
    B, S, D = x.shape
    two_d = wkv.shape[1]
    return pl.pallas_call(
        kv_projection_kernel,
        out_shape=jax.ShapeDtypeStruct((B, S, two_d), compute_dtype),
        grid_spec=pltpu.PrefetchScalarGridSpec(
            num_scalar_prefetch=0,
            grid=(B, S // s_tile),
            in_specs=[
                pl.BlockSpec((1, s_tile, D), lambda b, s: (b, s, 0)),
                pl.BlockSpec(wkv.shape, lambda b, s: (0, 0)),
                pl.BlockSpec(bkv.shape, lambda b, s: (0, 0)),
            ],
            out_specs=pl.BlockSpec((1, s_tile, two_d), lambda b, s: (b, s, 0)),
        ),
        compiler_params=pltpu.CompilerParams(
            dimension_semantics=("parallel", "parallel"),
            vmem_limit_bytes=vmem_limit),
    )(x, wkv, bkv)


def _attention_ffn_call(x, kv, weight_args, *, n_heads, q_tile, k_tile,
                        approx_recip, vmem_limit, single_buffer):
    B, S, D = x.shape
    num_q_tiles = S // q_tile
    num_k_blocks = S // k_tile

    kv_map = lambda b, t: (b, 0, 0)   # invariant within a batch row
    if single_buffer:
        kv_spec = pl.BlockSpec((1, S, 2 * D), kv_map, pipeline_mode=pl.Buffered(1))
    else:
        kv_spec = pl.BlockSpec((1, S, 2 * D), kv_map)

    in_specs = [pl.BlockSpec((1, q_tile, D), lambda b, t: (b, t, 0)),   # x tile
                kv_spec]
    in_specs += [_full_spec(w.shape, single_buffer) for w in weight_args]

    kernel = functools.partial(
        transformer_block_kernel,
        d_model=D, n_heads=n_heads, k_tile=k_tile,
        num_k_blocks=num_k_blocks, approx_recip=approx_recip)

    return pl.pallas_call(
        kernel,
        out_shape=jax.ShapeDtypeStruct((B, S, D), jnp.float32),
        grid_spec=pltpu.PrefetchScalarGridSpec(
            num_scalar_prefetch=0,
            grid=(B, num_q_tiles),
            in_specs=in_specs,
            out_specs=pl.BlockSpec((1, q_tile, D), lambda b, t: (b, t, 0)),
        ),
        compiler_params=pltpu.CompilerParams(
            dimension_semantics=("parallel", "parallel"),
            vmem_limit_bytes=vmem_limit),
    )(x, kv, *weight_args)


def transformer_block(x, params, *, n_heads, compute_dtype=jnp.bfloat16,
                      q_tile=None, k_tile=None):
    """x: (B, S, D) float32. params: PyTorch-layout weights. Returns (B, S, D) f32."""
    B, S, D = x.shape
    assert D % n_heads == 0, "d_model must be divisible by n_heads"
    H_FF = params['w1'].shape[0]
    d_k = D // n_heads

    cdt = jnp.dtype(compute_dtype)
    is_bf16 = cdt == jnp.dtype(jnp.bfloat16)

    cap = _vmem_capacity_bytes()
    large_vmem = cap >= (100 << 20)          # v5e / v6e (128 MiB) vs v7x (64 MiB)
    if q_tile is None:
        q_tile = _pick_tile(S, 512 if large_vmem else 128)
    if k_tile is None:
        k_tile = _pick_tile(S, 512)
    assert S % q_tile == 0 and S % k_tile == 0

    scale = 1.0 / math.sqrt(d_k)

    # Host-side weight packing: pre-transpose to (in, out); fuse K|V; fold the
    # attention scale into Wq/bq; cast matmul operands to the compute dtype.
    wq = (params['wq'].T * scale).astype(cdt)                              # (D, D)
    bq = params['bq'] * scale                                              # (1, D)
    wkv = jnp.concatenate([params['wk'].T, params['wv'].T], axis=1).astype(cdt)
    bkv = jnp.concatenate([params['bk'], params['bv']], axis=1)            # (1, 2D)
    wo = params['wo'].T.astype(cdt)                                        # (D, D)
    w1 = params['w1'].T.astype(cdt)                                        # (D, H_FF)
    w2 = params['w2'].T.astype(cdt)                                        # (H_FF, D)

    weight_args = (
        wq, bq, wo, params['bo'],
        params['g1'], params['be1'],
        w1, params['b1'],
        w2, params['b2'],
        params['g2'], params['be2'],
    )

    # Per-generation VMEM budget (headroom below physical capacity).
    vmem_ceiling = int(0.85 * cap)
    itemsize = cdt.itemsize
    kv_bytes = S * 2 * D * itemsize
    weight_bytes = sum(int(w.size) * w.dtype.itemsize for w in weight_args)
    act_bytes = q_tile * (4 * D + H_FF + 4 * k_tile) * 4
    est_main = weight_bytes + kv_bytes + 4 * q_tile * D * 4 + act_bytes + (16 << 20)
    vmem_main = int(min(max(est_main, 32 << 20), vmem_ceiling))

    est_kv = 2 * (int(wkv.size) * itemsize + q_tile * 3 * D * 4) + (16 << 20)
    vmem_kv = int(min(max(est_kv, 32 << 20), vmem_ceiling))

    # Stage 1: fused K|V projection (computed once per sequence tile).
    kv = _project_kv(x, wkv, bkv, q_tile, cdt, vmem_kv)

    # Stage 2: attention + FFN + LayerNorms, query-tiled.
    call = functools.partial(
        _attention_ffn_call, x, kv, weight_args,
        n_heads=n_heads, q_tile=q_tile, k_tile=k_tile,
        approx_recip=is_bf16, vmem_limit=vmem_main)
    try:
        return call(single_buffer=True)
    except Exception:
        # pipeline_mode=pl.Buffered(1) unsupported on this runtime: fall back to
        # default double-buffering (same kernel, just more VMEM used).
        return call(single_buffer=False)


# -----------------------------------------------------------------------------
# Params / reference
# -----------------------------------------------------------------------------
def init_params(key, d_model, n_heads, ff_hidden_dim):
    """Deterministic synthetic init (shapes match the PyTorch module)."""
    ks = jax.random.split(key, 6)

    def lin(k, out_dim, in_dim):
        kw, kb = jax.random.split(k)
        s = 1.0 / math.sqrt(in_dim)
        w = jax.random.uniform(kw, (out_dim, in_dim), jnp.float32, -s, s)
        b = jax.random.uniform(kb, (1, out_dim), jnp.float32, -s, s)
        return w, b

    wq, bq = lin(ks[0], d_model, d_model)
    wk, bk = lin(ks[1], d_model, d_model)
    wv, bv = lin(ks[2], d_model, d_model)
    wo, bo = lin(ks[3], d_model, d_model)
    w1, b1 = lin(ks[4], ff_hidden_dim, d_model)
    w2, b2 = lin(ks[5], d_model, ff_hidden_dim)
    g1 = jnp.ones((1, d_model), jnp.float32)
    be1 = jnp.zeros((1, d_model), jnp.float32)
    g2 = jnp.ones((1, d_model), jnp.float32)
    be2 = jnp.zeros((1, d_model), jnp.float32)
    return dict(wq=wq, bq=bq, wk=wk, bk=bk, wv=wv, bv=bv, wo=wo, bo=bo,
                g1=g1, be1=be1, w1=w1, b1=b1, w2=w2, b2=b2, g2=g2, be2=be2)


def reference_jax(x, p, n_heads):
    """Pure-JAX f32 reference (same math as PyTorch eval mode)."""
    B, S, D = x.shape
    d_k = D // n_heads

    def lin(a, w, b):
        return a @ w.T + b[0]

    q = lin(x, p['wq'], p['bq']).reshape(B, S, n_heads, d_k).transpose(0, 2, 1, 3)
    k = lin(x, p['wk'], p['bk']).reshape(B, S, n_heads, d_k).transpose(0, 2, 1, 3)
    v = lin(x, p['wv'], p['bv']).reshape(B, S, n_heads, d_k).transpose(0, 2, 1, 3)
    scores = jnp.einsum('bhqd,bhkd->bhqk', q, k) / math.sqrt(d_k)
    attn = jax.nn.softmax(scores, axis=-1)
    ctx = jnp.einsum('bhqk,bhkd->bhqd', attn, v).transpose(0, 2, 1, 3).reshape(B, S, D)
    attn_out = lin(ctx, p['wo'], p['bo'])

    def ln(h, g, b, eps=1e-5):
        mu = h.mean(-1, keepdims=True)
        var = ((h - mu) ** 2).mean(-1, keepdims=True)
        return (h - mu) / jnp.sqrt(var + eps) * g[0] + b[0]

    x1 = ln(x + attn_out, p['g1'], p['be1'])
    ffh = lin(x1, p['w1'], p['b1'])
    ffh = jnp.where(ffh > 0, ffh, 0.01 * ffh)
    ff_out = lin(ffh, p['w2'], p['b2'])
    return ln(x1 + ff_out, p['g2'], p['be2'])


if __name__ == "__main__":
    B, S, D = 2, 8, 32
    N_HEADS, FF_HIDDEN = 4, 64

    key = jax.random.PRNGKey(0)
    kx, kp = jax.random.split(key)
    x = jax.random.normal(kx, (B, S, D), jnp.float32)
    params = init_params(kp, D, N_HEADS, FF_HIDDEN)

    ref = reference_jax(x, params, N_HEADS)

    # Default path: bf16 MXU operands, f32 accumulation (inference tolerance).
    out_bf16 = transformer_block(x, params, n_heads=N_HEADS)
    out_bf16 = jax.block_until_ready(out_bf16)
    assert out_bf16.shape == (B, S, D)
    assert jnp.allclose(out_bf16, ref, atol=1e-1, rtol=1e-1), "bf16 mismatch vs reference"

    # Debug path: f32 operands, tighter check.
    out_f32 = transformer_block(x, params, n_heads=N_HEADS,
                                compute_dtype=jnp.float32)
    out_f32 = jax.block_until_ready(out_f32)
    assert jnp.allclose(out_f32, ref, atol=2e-2, rtol=2e-2), "f32 mismatch vs reference"

    print("KERNEL_OK")
</pallas_src>

<mosaic_0001>
module attributes {stable_mosaic.version = 11 : i64} {
  func.func @kv_projection_kernel(%arg0: i32, %arg1: i32, %arg2: memref<1x8x32xf32, #tpu.memory_space<vmem>>, %arg3: memref<32x64xbf16, #tpu.memory_space<vmem>>, %arg4: memref<1x64xf32, #tpu.memory_space<vmem>>, %arg5: memref<1x8x64xbf16, #tpu.memory_space<vmem>>) attributes {dimension_semantics = [#tpu.dimension_semantics<parallel>, #tpu.dimension_semantics<parallel>], iteration_bounds = array<i64: 2, 1>, scalar_prefetch = 0 : i64, scratch_operands = 0 : i64, tpu.core_type = #tpu.core_type<tc>, window_params = [{transform_indices = @transform_0, window_bounds = array<i64: 1, 8, 32>}, {pipeline_mode = #tpu.pipeline_mode<synchronous>, transform_indices = @transform_1, window_bounds = array<i64: 32, 64>}, {pipeline_mode = #tpu.pipeline_mode<synchronous>, transform_indices = @transform_2, window_bounds = array<i64: 1, 64>}, {transform_indices = @transform_3, window_bounds = array<i64: 1, 8, 64>}]} {
    %c0 = arith.constant 0 : index
    %c0_0 = arith.constant 0 : index
    %c0_1 = arith.constant 0 : index
    %0 = vector.load %arg2[%c0, %c0_0, %c0_1] : memref<1x8x32xf32, #tpu.memory_space<vmem>>, vector<1x8x32xf32>
    %1 = vector.shape_cast %0 : vector<1x8x32xf32> to vector<8x32xf32>
    %2 = arith.truncf %1 : vector<8x32xf32> to vector<8x32xbf16>
    %c0_2 = arith.constant 0 : index
    %c0_3 = arith.constant 0 : index
    %3 = vector.load %arg3[%c0_2, %c0_3] : memref<32x64xbf16, #tpu.memory_space<vmem>>, vector<32x64xbf16>
    %cst = arith.constant dense<0.000000e+00> : vector<8x64xf32>
    %4 = tpu.matmul %2, %3, %cst {dimension_numbers = #tpu.dot_dimension_numbers<[1], [0], [0], [1], [0, 0, 1, 1], [], []>} : vector<8x32xbf16>, vector<32x64xbf16>, vector<8x64xf32> -> vector<8x64xf32>
    %c0_4 = arith.constant 0 : index
    %c0_5 = arith.constant 0 : index
    %5 = vector.load %arg4[%c0_4, %c0_5] : memref<1x64xf32, #tpu.memory_space<vmem>>, vector<1x64xf32>
    %6 = vector.shape_cast %5 : vector<1x64xf32> to vector<64xf32>
    %7 = vector.shape_cast %6 : vector<64xf32> to vector<1x64xf32>
    %8 = vector.broadcast %7 : vector<1x64xf32> to vector<8x64xf32>
    %9 = arith.addf %4, %8 : vector<8x64xf32>
    %10 = arith.truncf %9 : vector<8x64xf32> to vector<8x64xbf16>
    %c0_6 = arith.constant 0 : index
    %c0_7 = arith.constant 0 : index
    %c0_8 = arith.constant 0 : index
    %11 = vector.load %arg5[%c0_6, %c0_7, %c0_8] : memref<1x8x64xbf16, #tpu.memory_space<vmem>>, vector<1x8x64xbf16>
    %12 = vector.shape_cast %11 : vector<1x8x64xbf16> to vector<8x64xbf16>
    %13 = vector.shape_cast %10 : vector<8x64xbf16> to vector<1x8x64xbf16>
    tpu.vector_store %arg5[%c0_6, %c0_7, %c0_8], %13 {strides = array<i32>} : memref<1x8x64xbf16, #tpu.memory_space<vmem>>, vector<1x8x64xbf16>,
    return
  }
  func.func @transform_0(%arg0: i32, %arg1: i32) -> (i32, i32, i32) {
    %c0_i32 = arith.constant 0 : i32
    %c0_i32_0 = arith.constant 0 : i32
    return %arg0, %arg1, %c0_i32 : i32, i32, i32
  }
  func.func @transform_1(%arg0: i32, %arg1: i32) -> (i32, i32) {
    %c0_i32 = arith.constant 0 : i32
    %c0_i32_0 = arith.constant 0 : i32
    %c0_i32_1 = arith.constant 0 : i32
    return %c0_i32, %c0_i32_0 : i32, i32
  }
  func.func @transform_2(%arg0: i32, %arg1: i32) -> (i32, i32) {
    %c0_i32 = arith.constant 0 : i32
    %c0_i32_0 = arith.constant 0 : i32
    %c0_i32_1 = arith.constant 0 : i32
    return %c0_i32, %c0_i32_0 : i32, i32
  }
  func.func @transform_3(%arg0: i32, %arg1: i32) -> (i32, i32, i32) {
    %c0_i32 = arith.constant 0 : i32
    %c0_i32_0 = arith.constant 0 : i32
    return %arg0, %arg1, %c0_i32 : i32, i32, i32
  }
}

</mosaic_0001>

<bundles_post_ra>
// kernel: tpu_custom_call.1
= control target key start
LH: loop header
LB: loop body
LE: loop exit
PB: predicated region body
PF: predicated region fallthrough
CT: control target
= control target key end

     0   :  { %8 = vsyncpa [#allocation3], 0  ;;  %s896_s0 = inlined_call_operand.hbm [shape: f32[2,8,32], index: 0, kind: input, shape index: {}]   ;;  %s897_s1 = inlined_call_operand.hbm [shape: bf16[32,64], index: 1, kind: input, shape index: {}]   ;;  %s898_s2 = inlined_call_operand.vmem [shape: f32[1,64], index: 2, kind: input, shape index: {}]   ;;  %s899_s3 = inlined_call_operand.hbm [shape: bf16[2,8,64], index: 3, kind: output, shape index: {}]  }
   0x1   :  { %10 = vsyncpa [#allocation3 + $0x1], 0 }
   0x2   :  { %11 = vsyncpa [#allocation6], 0 }
   0x3   :  { %12 = vsyncpa [#allocation4], 0 }
   0x4   :  { %14 = vsyncpa [#allocation4 + $0x1], 0  ;;  %s678_s12 = smov 0   ;;  %s680_s13 = smov 0  }
   0x5   :  { %s682_s14 = smov 0   ;;  %s684_s15 = smov 0  }
   0x6   :  { %s686_s16 = smov 0   ;;  %s688_s17 = smov 0  }
   0x7 LB: > { %s396_s18 = sadd.s32 4294967295, %s649_s17   ;;  %s397_s19 = sadd.s32 4294967294, %s649_s17   ;;  %s649_s17 = sphi %s688_s17, %s20_s17   ;;  %s645_s16 = sphi %s686_s16, %s923_s16   ;;  %s641_s15 = sphi %s684_s15, %s922_s15   ;;  %s637_s14 = sphi %s682_s14, %s921_s14   ;;  %s633_s13 = sphi %s680_s13, %s920_s13   ;;  %s629_s12 = sphi %s678_s12, %s919_s12  }
   0x8   : > { %p54_p0 = scmp.ne.s32.totalorder %s633_s13, %s629_s12  ;;  %p712_p1 = scmp.eq.s32.totalorder %s396_s18, 0 }
   0x9   : > { %p716_p2 = scmp.eq.s32.totalorder %s396_s18, 1  ;;  %p128_p3 = scmp.eq.s32.totalorder %s397_s19, 1 }
   0xa   : > { %s904_s20 = scalar_select %p712_p1, 1, 0 }
   0xb   : > { %s905_s21 = scalar_select %p716_p2, 1, 0 }
   0xc   : > { %p722_p4 = por %p712_p1, %p54_p0  ;;  %p398_p5 = scmp.ge.s32.totalorder %s649_s17, 1 }
   0xd   : > { %p727_p6 = por %p128_p3, %p54_p0  ;;  %p135_p7 = scmp.lt.s32.totalorder %s649_s17, 3 }
   0xe   : > { %s906_s22 = scalar_select %p722_p4, 1, 0 }
   0xf   : > { %s907_s23 = scalar_select %p727_p6, 1, 0 }
  0x10   : > { %p732_p8 = pnand %p398_p5, %p135_p7  ;;  %s651_s25 = smov [#allocation5]  }
  0x11   : > { %s147_s26 = sshll.u32 %s651_s25, 4  ;;  %s32_s28 = sadd.s32 1, %s645_s16  ;;  %s148_s26 = int_to_ptr.vmem [resolvable:$true] %s147_s26 }
  0x12   : > { %s908_s24 = scalar_select %p732_p8, 1, 0 }
  0x13   : > { %p434_p9 = pneg %p732_p8  ;;  %s505_s4 = scalar_lea.hbm %s897_s1, 256 }
  0x14   : > { %p506_p12 = scmp.ne.s32.totalorder %s897_s1, %s505_s4  ;;  %p512_p5 = scmp.lt.u32.totalorder %s505_s4, %s897_s1 }
  0x15   : > { %p741_p11 = pnand %p434_p9, %p712_p1 }
  0x17   : > { %p507_p13 = pneg %p741_p11 }
  0x19   : > { %p508_p0 = pnand %p507_p13, %p506_p12 }
  0x1b   : > { %p509_p3 = pneg %p508_p0 }
  0x1d   : > { %p514_p7 = pnand %p512_p5, %p509_p3 }
  0x1f   : > { %517 = shalt.err (!%p514_p7)
}
  0x20   : > { %s518_s9 = scalar_lea.vmem %s148_s26, 256  ;;  %p526_p1 = scmp.lt.s32.totalorder %s148_s26, %s148_s26 }
  0x21   : > { %p519_p9 = scmp.ne.s32.totalorder %s148_s26, %s518_s9  ;;  %p527_p4 = scmp.lt.s32.totalorder %s518_s9, %s518_s9 }
  0x23   : > { %p521_p10 = pnand %p519_p9, %p507_p13  ;;  %p528_p8 = por %p527_p4, %p526_p1 }
  0x25   : > { %p522_p6 = pneg %p521_p10 }
  0x27   : > { %p529_p2 = pnand %p528_p8, %p522_p6 }
  0x29   : > { %532 = shalt.err (!%p529_p2)
}
  0x2a   : > { %s652_s10 = smov 64   ;;  %s653_s11 = smov 4  }
  0x2b   : > { %437 = dma.hbm_to_vmem [thread:$0]  (!%p741_p11), %s897_s1, 256, %s148_s26, [#allocation6], %s652_s10, %s652_s10, %s653_s11  }
  0x2c   : > { %p34_p1 = scmp.ge.s32.totalorder %s32_s28, 2  ;;  %s41_s25 = sadd.s32 1, %s637_s14 }
  0x2d   : > { %p48_p2 = scmp.ne.s32.totalorder %s637_s14, %s633_s13  ;;  %p49_p4 = scmp.eq.s32.totalorder %s649_s17, 0 }
  0x2e   : > { %s925_s28 = smov (%p34_p1, %s32_s28), 0  ;;  %p911_p8 = scmp.ne.s32.totalorder %s905_s21, 0 }
  0x2f   : > { %p768_p6 = por %p49_p4, %p48_p2  ;;  %s36_s27 = ssub.s32 %s645_s16, %s925_s28 }
  0x30   : > { %p774_p10 = por %p911_p8, %p48_p2  ;;  %p447_p12 = scmp.lt.s32.totalorder %s649_s17, 2 }
  0x31   : > { %p39_p11 = scmp.eq.s32.totalorder %s36_s27, 0  ;;  %s164_s26 = sand.u32 1, %s637_s14  }
  0x32   : > { %s401_s4 = sshll.u32 %s164_s26, 3  ;;  %s402_s6 = sshll.u32 %s645_s16, 7 }
  0x33   : > { %s783_s5 = scalar_select %p39_p11, %s637_s14, %s41_s25  }
  0x34   : > { %s789_s9 = scalar_lea.hbm %s896_s0, %s402_s6  ;;  %s168_s21 = scalar_lea.vmem [#allocation2], %s401_s4 }
  0x35   : > { %s176_s10 = sshll.u32 %s168_s21, 4  ;;  %p795_p13 = pnand %p447_p12, %p768_p6  ;;  %s791_s10 = int_to_ptr.vmem [resolvable:$true] %s176_s10 }
  0x36   : > { %s165_s18 = scalar_lea.sflag [#allocation3], %s164_s26  ;;  %s533_s19 = scalar_lea.hbm %s789_s9, 128 }
  0x37   : > { %p534_p0 = scmp.ne.s32.totalorder %s789_s9, %s533_s19  ;;  %p535_p3 = pneg %p795_p13 }
  0x38   : > { %s538_s4 = scalar_lea.hbm %s896_s0, 256  ;;  %p539_p9 = scmp.lt.u32.totalorder %s789_s9, %s896_s0 }
  0x39   : > { %p536_p5 = pnand %p535_p3, %p534_p0  ;;  %p540_p1 = scmp.lt.u32.totalorder %s538_s4, %s533_s19 }
  0x3a   : > { %p542_p4 = scmp.lt.u32.totalorder %s533_s19, %s789_s9 }
  0x3b   : > { %p537_p7 = pneg %p536_p5  ;;  %p541_p2 = por %p540_p1, %p539_p9 }
  0x3d   : > { %p543_p6 = por %p542_p4, %p541_p2 }
  0x3f   : > { %p544_p8 = pnand %p543_p6, %p537_p7 }
  0x41   : > { %547 = shalt.err (!%p544_p8)
}
  0x42   : > { %s548_s26 = scalar_lea.vmem %s791_s10, 128  ;;  %s654_s7 = smov [#allocation2]  }
  0x43   : > { %p549_p12 = scmp.ne.s32.totalorder %s791_s10, %s548_s26  ;;  %s553_s8 = sshll.u32 %s654_s7, 4  ;;  %s554_s8 = int_to_ptr.vmem [resolvable:$false] %s553_s8 }
  0x44   : > { %s555_s21 = scalar_lea.vmem %s554_s8, 256  ;;  %p556_p5 = scmp.lt.s32.totalorder %s791_s10, %s554_s8 }
  0x45   : > { %p551_p11 = pnand %p549_p12, %p535_p3  ;;  %p557_p9 = scmp.lt.s32.totalorder %s555_s21, %s548_s26 }
  0x47   : > { %p552_p0 = pneg %p551_p11  ;;  %p558_p1 = por %p557_p9, %p556_p5 }
  0x49   : > { %p559_p2 = pnand %p558_p1, %p552_p0 }
  0x4b   : > { %562 = shalt.err (!%p559_p2)
}
  0x4c   : > { %441 = dma.hbm_to_vmem [thread:$0]  (!%p795_p13), %s789_s9, 128, %s791_s10, %s165_s18  }
  0x4d   : > { %p914_p7 = scmp.ne.s32.totalorder %s908_s24, 0 }
  0x4e   : > { %s827_s19 = sand.u32 (!%p914_p7), 1, %s633_s13   ;;  %p915_p3 = scmp.ne.s32.totalorder (!%p914_p7), %s906_s22, 0 }
  0x4f   : > { %185 = sbr.rel (%p914_p7) target bundleno = 329 (0x149), region = 32  ;;  %s404_s25 = sshll.u32 (!%p914_p7), %s827_s19, 3 }
  0x50   : > { %s188_s27 = scalar_lea.sflag (!%p914_p7), [#allocation3], %s827_s19  ;;  %s191_s4 = scalar_lea.vmem (!%p914_p7), [#allocation2], %s404_s25 }
  0x56   : > { %616 = dma.done.wait (%p915_p3), %s188_s27, 128  }
  0x57   : > { %618 = vsyncadd (%p915_p3), %s188_s27, 4294967168  ;;  %p916_p4 = scmp.ne.s32.totalorder %s904_s20, 0 }
  0x59   : > { %620 = dma.done.wait (%p916_p4), [#allocation6], 256  }
  0x5a   : > { %622 = vsyncadd (%p916_p4), [#allocation6], 4294967040  ;;  %v655_v0 = vmov 0.0   ;;  %vm656_vm0 = vmmov 0   ;;  %v503_v1 = vld [vmem:[#allocation5] sm:$0xff]   ;;  %v504_v2 = vld [vmem:[#allocation5 + $0x8] sm:$0xff]  }
  0x5b   : > { %418 = vmatprep.subr.bf16.mxu0 %v655_v0  ;;  %422 = vmatprep.mubr.msk.bf16.mxu0 %vm656_vm0, %v655_v0  ;;  %v219_v3 = vld [vmem:[%s191_s4] sm:$0xff]  ;;  %vm244_vm1 = vcmask 261120   ;;  %s406_s22 = sshll.u32 %s827_s19, 2  ;;  %s412_s9 = sshll.u32 %s641_s15, 6  ;;  %vm289_vm2 = vcmask 519168  }
  0x5c   : > { %419 = vmatpush3.bf16.msra.mxu0 %v503_v1  ;;  %v220_v4 = vpack.c.bf16 %v219_v3, %v219_v3  ;;  %v407_v5 = vld [vmem:[%s898_s2] ss:$0 sm:$0xff]  ;;  %s217_s10 = scalar_lea.vmem [#allocation7], %s406_s22  ;;  %s847_s6 = scalar_lea.hbm %s899_s3, %s412_s9 }
  0x5d   : > { %420 = vmatprep.subr.bf16.mxu0 %v655_v0  ;;  %s306_s11 = sshll.u32 %s217_s10, 4  ;;  %s292_s15 = scalar_lea.sflag [#allocation4], %s827_s19  ;;  %s849_s11 = int_to_ptr.vmem [resolvable:$true] %s306_s11 }
  0x5e   : > { %s563_s26 = scalar_lea.vmem %s849_s11, 64  ;;  %s657_s7 = smov [#allocation7]  }
  0x5f   : > { %p564_p13 = scmp.ne.s32.totalorder %s849_s11, %s563_s26  ;;  %s567_s8 = sshll.u32 %s657_s7, 4  ;;  %s568_s8 = int_to_ptr.vmem [resolvable:$false] %s567_s8 }
  0x60   : > { %421 = vmatpush3.bf16.msra.mxu0 %v504_v2  ;;  %s569_s21 = scalar_lea.vmem %s568_s8, 128  ;;  %p570_p12 = scmp.lt.s32.totalorder %s849_s11, %s568_s8 }
  0x61   : > { %p565_p6 = pnand %p564_p13, %p774_p10  ;;  %p571_p11 = scmp.lt.s32.totalorder %s569_s21, %s563_s26 }
  0x63   : > { %423 = vmatmul.mubr.msk.bf16.vlgmr.msra.gmra.mrb[0].mxu0 %vm244_vm1, %v220_v4  ;;  %p566_p8 = pneg %p565_p6  ;;  %p572_p0 = por %p571_p11, %p570_p12 }
  0x65   : > { %p573_p5 = pnand %p572_p0, %p566_p8 }
 0x136   : > { %v282_v6 = vpop.f32.mrb[0].mxu0 }
 0x137   : > { %v283_v7 = vadd.f32 %v407_v5, %v282_v6  ;;  %v424_v8 = vpop.f32.mrb[1].mxu0 }
 0x138   : > { %v285_v9 = vpop.f32.mrb[2].mxu0 }
 0x139   : > { %v288_v10 = vpack.c.bf16 %v283_v7, %v283_v7  ;;  %v425_v11 = vpop.f32.mrb[3].mxu0 }
 0x13b   : > { %290 = vst.msk [vmem:[%s217_s10] sm:$0xf] %vm289_vm2, %v288_v10 }
 0x13c   : > { %576 = shalt.err (!%p573_p5)
}
 0x13d   : > { %s577_s19 = scalar_lea.hbm %s847_s6, 64  ;;  %s581_s4 = scalar_lea.hbm %s899_s3, 128 }
 0x13e   : > { %p578_p9 = scmp.ne.s32.totalorder %s847_s6, %s577_s19  ;;  %p582_p7 = scmp.lt.u32.totalorder %s847_s6, %s899_s3 }
 0x13f   : > { %p583_p3 = scmp.lt.u32.totalorder %s581_s4, %s577_s19  ;;  %p585_p13 = scmp.lt.u32.totalorder %s577_s19, %s847_s6 }
 0x140   : > { %p579_p1 = pnand %p578_p9, %p774_p10 }
 0x141   : > { %p584_p4 = por %p583_p3, %p582_p7 }
 0x142   : > { %p580_p2 = pneg %p579_p1 }
 0x143   : > { %p586_p6 = por %p585_p13, %p584_p4 }
 0x145   : > { %p587_p8 = pnand %p586_p6, %p580_p2 }
 0x147   : > { %590 = shalt.err (!%p587_p8)
}
 0x148   : > { %432 = dma.vmem_to_hbm [thread:$0]  (%p774_p10), %s849_s11, 64, %s847_s6, %s292_s15  }
 0x149 PF: > { %s318_s20 = sand.u32 1, %s629_s12   ;;  %p917_p12 = scmp.ne.s32.totalorder %s907_s23, 0 }
 0x14a   : > { %p918_p11 = scmp.ge.s32.totalorder %s649_s17, 2  ;;  %s319_s9 = scalar_lea.sflag [#allocation4], %s318_s20 }
 0x14c   : > { %p443_p0 = pnand %p918_p11, %p917_p12 }
 0x14e   : > { %624 = dma.done.wait (!%p443_p0), %s319_s9, 64  }
 0x14f   : > { %626 = vsyncadd (!%p443_p0), %s319_s9, 4294967232  ;;  %s20_s17 = sadd.s32 1, %s649_s17   ;;  %s919_s12 = smov %s633_s13 }
 0x150   : > { %p17_p5 = scmp.ge.s32.totalorder %s20_s17, 4   ;;  %s920_s13 = smov %s637_s14 }
 0x151   : > { %s921_s14 = smov %s783_s5  ;;  %s922_s15 = smov %s645_s16 }
 0x152   : > { %s923_s16 = smov %s925_s28  ;;  %19 = sbr.rel (!%p17_p5) target bundleno = 7 (0x7), region = 81 }
 0x159   :  { %324 = vsyncpa [#allocation3], 1 }
 0x15a   :  { %326 = vsyncpa [#allocation3 + $0x1], 1 }
 0x15b   :  { %327 = vsyncpa [#allocation6], 1 }
 0x15c   :  { %328 = vsyncpa [#allocation4], 1 }
 0x15d   :  { %330 = vsyncpa [#allocation4 + $0x1], 1 }

</bundles_post_ra>
